<compile_context>
chip_gen: v5e
topology: v5e:2x2
jax: 0.10.0
libtpu: 0.0.40
codegen_flags: <defaults>
</compile_context>

<pallas_src>
import functools

import jax
import jax.numpy as jnp
from jax.experimental import pallas as pl
from jax.experimental.pallas import tpu as pltpu

KL_COEF = 0.02
EPS = 1e-8

_SINGLE_BLOCK_BYTES = 6 * 1024 * 1024    # whole-[B,T] block if it fits this
_TILE_TARGET_BYTES = 2 * 1024 * 1024     # ~2 MiB lp tiles otherwise
_VMEM_LIMIT_CAP = 48 * 1024 * 1024       # stay well under v7x 64 MiB physical
_VMEM_LIMIT_FLOOR = 24 * 1024 * 1024


def _grpo_kernel(lp_ref, lref_ref, rew_ref, out_ref, acc_lp, acc_plp,
                 *, n_rows, n_cols, t_tile, kl_coef, eps):
    # lp_ref:   [B, T_TILE] policy token log-probs (native dtype, VMEM tile)
    # lref_ref: [B, 1]      reference sequence log-prob (VMEM, resident)
    # rew_ref:  [B, 1]      rewards                     (VMEM, resident)
    # out_ref:  (5,)        scalar results              (SMEM)
    # acc_lp:   [B, 1] f32  running rowsum(lp)          (VMEM scratch)
    # acc_plp:  [B, 1] f32  running rowsum(exp(lp)*lp)  (VMEM scratch)
    t = pl.program_id(0)
    nt = pl.num_programs(0)

    @pl.when(t == 0)
    def _init():
        acc_lp[...] = jnp.zeros_like(acc_lp)
        acc_plp[...] = jnp.zeros_like(acc_plp)

    def _accumulate(masked):
        lp = lp_ref[...].astype(jnp.float32)           # [B, T_TILE], f32 math
        if masked:
            # Mask BEFORE exp(): out-of-range lanes of the last block hold
            # unspecified VMEM bits (possibly NaN/Inf after the f32 cast);
            # zeros are transparent for both rowsums (exp(0)*0 == 0).
            col = t * t_tile + jax.lax.broadcasted_iota(jnp.int32, lp.shape, 1)
            lp = jnp.where(col < n_cols, lp, jnp.float32(0.0))
        acc_lp[...] += jnp.sum(lp, axis=-1, keepdims=True)
        acc_plp[...] += jnp.sum(jnp.exp(lp) * lp, axis=-1, keepdims=True)

    if n_cols % t_tile == 0:
        # Evenly tiled (or single full-width block): no mask ops at all.
        _accumulate(masked=False)
    else:
        # Ragged T: run the (iota + cmp + select) mask only on the last grid
        # step; all other tiles stay on the minimal cast/mul/reduce path.
        @pl.when(t < nt - 1)
        def _full_tiles():
            _accumulate(masked=False)

        @pl.when(t == nt - 1)
        def _ragged_tail():
            _accumulate(masked=True)

    @pl.when(t == nt - 1)
    def _finalize():
        inv_b = jnp.float32(1.0 / n_rows)
        inv_bt = jnp.float32(1.0 / (n_rows * n_cols))

        sum_lp = acc_lp[...]                           # [B, 1]
        sum_plp = acc_plp[...]                         # [B, 1]
        rew = rew_ref[...].astype(jnp.float32)         # [B, 1]
        lref = lref_ref[...].astype(jnp.float32)       # [B, 1]

        # entropy: -(exp(lp) * lp).sum(-1).mean()
        ent = -jnp.sum(sum_plp) * inv_b

        # advantage: (r - mean(r)) / (std(r, unbiased=False) + eps)
        r_mean = jnp.sum(rew) * inv_b
        centered = rew - r_mean
        var = jnp.sum(centered * centered) * inv_b
        std = jnp.sqrt(var)
        adv = centered / (std + jnp.float32(eps))

        # policy gradient: -(adv[:,None] * lp).mean() == -sum_b adv_b*rowsum_b/(B*T)
        pg = -jnp.sum(adv * sum_lp) * inv_bt

        # kl penalty: kl_coef * (lp.sum(-1) - lref).mean()
        kl = jnp.float32(kl_coef) * (jnp.sum(sum_lp) - jnp.sum(lref)) * inv_b

        loss = pg + kl
        adv_abs_mean = jnp.sum(jnp.abs(adv)) * inv_b

        out_ref[0] = loss
        out_ref[1] = pg
        out_ref[2] = kl
        out_ref[3] = ent
        out_ref[4] = adv_abs_mean


def grpo_loss(logp_tokens, logp_ref, rewards, *, kl_coef=KL_COEF, eps=EPS,
              single_block_bytes=_SINGLE_BLOCK_BYTES,
              tile_target_bytes=_TILE_TARGET_BYTES):
    """logp_tokens: [B, T] (native dtype, e.g. bf16), logp_ref: [B], rewards: [B].

    Returns (loss, pg, kl, entropy, |adv|.mean()) as f32 scalars.
    """
    B, T = logp_tokens.shape
    itemsize = jnp.dtype(logp_tokens.dtype).itemsize
    total_bytes = B * T * itemsize

    # --- Byte-budgeted tile selection -------------------------------------
    if total_bytes <= single_block_bytes:
        t_tile = T                                     # single-block fast path
    else:
        t_tile = (tile_target_bytes // (B * itemsize)) // 128 * 128
        t_tile = max(int(t_tile), 128)
        if t_tile >= T:
            t_tile = T
    grid = (pl.cdiv(T, t_tile),)

    block_bytes = B * t_tile * itemsize
    vmem_limit = int(min(_VMEM_LIMIT_CAP,
                         max(_VMEM_LIMIT_FLOOR, 2 * block_bytes + (2 << 20))))

    lref = logp_ref.reshape(B, 1)   # metadata-only reshape; cast happens in-kernel
    rew = rewards.reshape(B, 1)

    kernel = functools.partial(
        _grpo_kernel,
        n_rows=B, n_cols=T, t_tile=t_tile, kl_coef=kl_coef, eps=eps)

    cost = pl.CostEstimate(
        flops=5 * B * T,                       # cast + mul + two reduction adds
        transcendentals=B * T,                 # one exp per token
        bytes_accessed=total_bytes + 2 * B * 4 + 5 * 4)

    out = pl.pallas_call(
        kernel,
        out_shape=jax.ShapeDtypeStruct((5,), jnp.float32),
        grid=grid,
        in_specs=[
            pl.BlockSpec((B, t_tile), lambda t: (0, t)),   # token log-probs (tiled)
            pl.BlockSpec((B, 1), lambda t: (0, 0)),        # logp_ref (resident)
            pl.BlockSpec((B, 1), lambda t: (0, 0)),        # rewards  (resident)
        ],
        out_specs=pl.BlockSpec(memory_space=pltpu.MemorySpace.SMEM),
        scratch_shapes=[
            pltpu.VMEM((B, 1), jnp.float32),   # rowsum(lp)
            pltpu.VMEM((B, 1), jnp.float32),   # rowsum(exp(lp)*lp)
        ],
        compiler_params=pltpu.CompilerParams(
            dimension_semantics=("arbitrary",),   # reduction over T tiles
            vmem_limit_bytes=vmem_limit),
        cost_estimate=cost,
    )(logp_tokens, lref, rew)

    return out[0], out[1], out[2], out[3], out[4]


def _reference(logp_tokens, logp_ref, rewards):
    # Pure-JAX mirror of the PyTorch forward (rewards.std(unbiased=False)).
    lp = logp_tokens.astype(jnp.float32)
    probs = jnp.exp(lp)
    ent = -(probs * lp).sum(-1).mean()
    adv = (rewards - rewards.mean()) / (rewards.std() + EPS)   # ddof=0
    pg = -(adv[:, None] * lp).mean()
    kl = KL_COEF * (lp.sum(-1) - logp_ref).mean()
    loss = pg + kl
    return loss, pg, kl, ent, jnp.abs(adv).mean()


if __name__ == "__main__":
    key = jax.random.PRNGKey(0)
    k1, k2, k3 = jax.random.split(key, 3)

    # --- Small shapes from the module spec (single-block path, f32) ---------
    B, T = 4, 16
    logp_tokens = -jax.nn.softplus(jax.random.normal(k1, (B, T), jnp.float32))
    logp_ref = -jax.nn.softplus(jax.random.normal(k2, (B,), jnp.float32)) * T
    rewards = jax.random.normal(k3, (B,), jnp.float32)

    outs = jax.block_until_ready(grpo_loss(logp_tokens, logp_ref, rewards))
    refs = _reference(logp_tokens, logp_ref, rewards)
    for o, r in zip(outs, refs):
        assert jnp.allclose(o, r, atol=1e-5, rtol=1e-5), (o, r)

    # --- Native bf16 inputs: no wrapper upcast, cast happens per tile -------
    lp_bf16 = logp_tokens.astype(jnp.bfloat16)
    outs_bf = jax.block_until_ready(grpo_loss(lp_bf16, logp_ref, rewards))
    refs_bf = _reference(lp_bf16, logp_ref, rewards)
    for o, r in zip(outs_bf, refs_bf):
        assert jnp.allclose(o, r, atol=1e-4, rtol=1e-4), (o, r)

    # --- Mid-size T: byte-budgeted heuristic hits the single-block fast path
    kb1, kb2, kb3 = jax.random.split(jax.random.PRNGKey(1), 3)
    B2, T2 = 8, 2500
    lp2 = -jax.nn.softplus(jax.random.normal(kb1, (B2, T2), jnp.float32))
    lr2 = -jax.nn.softplus(jax.random.normal(kb2, (B2,), jnp.float32)) * T2
    rw2 = jax.random.normal(kb3, (B2,), jnp.float32)
    outs2 = jax.block_until_ready(grpo_loss(lp2, lr2, rw2))
    refs2 = _reference(lp2, lr2, rw2)
    for o, r in zip(outs2, refs2):
        assert jnp.allclose(o, r, atol=1e-3, rtol=1e-4), (o, r)

    # --- Force the multi-tile path: accumulation + gated ragged-tail mask ---
    # (single_block_bytes=0 and a tiny tile budget -> t_tile=256, 10 grid
    #  steps, last tile ragged & masked, all others unmasked.)
    outs3 = jax.block_until_ready(
        grpo_loss(lp2, lr2, rw2, single_block_bytes=0, tile_target_bytes=8 * 1024))
    for o, r in zip(outs3, refs2):
        assert jnp.allclose(o, r, atol=1e-3, rtol=1e-4), (o, r)

    print("KERNEL_OK")
</pallas_src>

<mosaic_0001>
module attributes {stable_mosaic.version = 11 : i64} {
  func.func @_grpo_kernel(%arg0: i32, %arg1: memref<4x16xf32, #tpu.memory_space<vmem>>, %arg2: memref<4x1xf32, #tpu.memory_space<vmem>>, %arg3: memref<4x1xf32, #tpu.memory_space<vmem>>, %arg4: memref<5xf32, #tpu.memory_space<smem>>, %arg5: memref<4x1xf32, #tpu.memory_space<vmem>>, %arg6: memref<4x1xf32, #tpu.memory_space<vmem>>) attributes {dimension_semantics = [#tpu.dimension_semantics<arbitrary>], iteration_bounds = array<i64: 1>, scalar_prefetch = 0 : i64, scratch_operands = 2 : i64, tpu.core_type = #tpu.core_type<tc>, window_params = [{transform_indices = @transform_0, window_bounds = array<i64: 4, 16>}, {pipeline_mode = #tpu.pipeline_mode<synchronous>, transform_indices = @transform_1, window_bounds = array<i64: 4, 1>}, {pipeline_mode = #tpu.pipeline_mode<synchronous>, transform_indices = @transform_2, window_bounds = array<i64: 4, 1>}, {transform_indices = @transform_3, window_bounds = array<i64: 5>}]} {
    %c0_i32 = arith.constant 0 : i32
    %0 = arith.cmpi eq, %arg0, %c0_i32 : i32
    %1 = arith.extui %0 : i1 to i32
    %c0_i32_0 = arith.constant 0 : i32
    %2 = arith.cmpi ne, %1, %c0_i32_0 : i32
    scf.if %2 {
      %cst_13 = arith.constant 0.000000e+00 : f32
      %19 = vector.broadcast %cst_13 : f32 to vector<4x1xf32>
      %c0_14 = arith.constant 0 : index
      %c0_15 = arith.constant 0 : index
      %20 = vector.load %arg5[%c0_14, %c0_15] : memref<4x1xf32, #tpu.memory_space<vmem>>, vector<4x1xf32>
      tpu.vector_store %arg5[%c0_14, %c0_15], %19 {strides = array<i32>} : memref<4x1xf32, #tpu.memory_space<vmem>>, vector<4x1xf32>,
      %cst_16 = arith.constant 0.000000e+00 : f32
      %21 = vector.broadcast %cst_16 : f32 to vector<4x1xf32>
      %c0_17 = arith.constant 0 : index
      %c0_18 = arith.constant 0 : index
      %22 = vector.load %arg6[%c0_17, %c0_18] : memref<4x1xf32, #tpu.memory_space<vmem>>, vector<4x1xf32>
      tpu.vector_store %arg6[%c0_17, %c0_18], %21 {strides = array<i32>} : memref<4x1xf32, #tpu.memory_space<vmem>>, vector<4x1xf32>,
    } else {
    }
    %c0 = arith.constant 0 : index
    %c0_1 = arith.constant 0 : index
    %3 = vector.load %arg1[%c0, %c0_1] : memref<4x16xf32, #tpu.memory_space<vmem>>, vector<4x16xf32>
    %c0_2 = arith.constant 0 : index
    %c0_3 = arith.constant 0 : index
    %4 = vector.load %arg5[%c0_2, %c0_3] : memref<4x1xf32, #tpu.memory_space<vmem>>, vector<4x1xf32>
    %cst = arith.constant dense<0.000000e+00> : vector<4xf32>
    %5 = vector.multi_reduction <add>, %3, %cst [1] : vector<4x16xf32> to vector<4xf32>
    %6 = vector.shape_cast %5 : vector<4xf32> to vector<4x1xf32>
    %7 = arith.addf %4, %6 : vector<4x1xf32>
    %c0_4 = arith.constant 0 : index
    %c0_5 = arith.constant 0 : index
    %8 = vector.load %arg5[%c0_4, %c0_5] : memref<4x1xf32, #tpu.memory_space<vmem>>, vector<4x1xf32>
    tpu.vector_store %arg5[%c0_4, %c0_5], %7 {strides = array<i32>} : memref<4x1xf32, #tpu.memory_space<vmem>>, vector<4x1xf32>,
    %c0_6 = arith.constant 0 : index
    %c0_7 = arith.constant 0 : index
    %9 = vector.load %arg6[%c0_6, %c0_7] : memref<4x1xf32, #tpu.memory_space<vmem>>, vector<4x1xf32>
    %10 = math.exp %3 : vector<4x16xf32>
    %11 = arith.mulf %10, %3 : vector<4x16xf32>
    %cst_8 = arith.constant dense<0.000000e+00> : vector<4xf32>
    %12 = vector.multi_reduction <add>, %11, %cst_8 [1] : vector<4x16xf32> to vector<4xf32>
    %13 = vector.shape_cast %12 : vector<4xf32> to vector<4x1xf32>
    %14 = arith.addf %9, %13 : vector<4x1xf32>
    %c0_9 = arith.constant 0 : index
    %c0_10 = arith.constant 0 : index
    %15 = vector.load %arg6[%c0_9, %c0_10] : memref<4x1xf32, #tpu.memory_space<vmem>>, vector<4x1xf32>
    tpu.vector_store %arg6[%c0_9, %c0_10], %14 {strides = array<i32>} : memref<4x1xf32, #tpu.memory_space<vmem>>, vector<4x1xf32>,
    %c0_i32_11 = arith.constant 0 : i32
    %16 = arith.cmpi eq, %arg0, %c0_i32_11 : i32
    %17 = arith.extui %16 : i1 to i32
    %c0_i32_12 = arith.constant 0 : i32
    %18 = arith.cmpi ne, %17, %c0_i32_12 : i32
    scf.if %18 {
      %c0_13 = arith.constant 0 : index
      %c0_14 = arith.constant 0 : index
      %19 = vector.load %arg5[%c0_13, %c0_14] : memref<4x1xf32, #tpu.memory_space<vmem>>, vector<4x1xf32>
      %c0_15 = arith.constant 0 : index
      %c0_16 = arith.constant 0 : index
      %20 = vector.load %arg6[%c0_15, %c0_16] : memref<4x1xf32, #tpu.memory_space<vmem>>, vector<4x1xf32>
      %c0_17 = arith.constant 0 : index
      %c0_18 = arith.constant 0 : index
      %21 = vector.load %arg3[%c0_17, %c0_18] : memref<4x1xf32, #tpu.memory_space<vmem>>, vector<4x1xf32>
      %c0_19 = arith.constant 0 : index
      %c0_20 = arith.constant 0 : index
      %22 = vector.load %arg2[%c0_19, %c0_20] : memref<4x1xf32, #tpu.memory_space<vmem>>, vector<4x1xf32>
      %23 = vector.shape_cast %20 : vector<4x1xf32> to vector<1x4x1xf32>
      %cst_21 = arith.constant dense<0.000000e+00> : vector<1xf32>
      %24 = vector.multi_reduction <add>, %23, %cst_21 [1, 2] : vector<1x4x1xf32> to vector<1xf32>
      %25 = vector.shape_cast %24 : vector<1xf32> to vector<1x1x1xf32>
      %26 = vector.extract %25[0, 0, 0] : f32 from vector<1x1x1xf32>
      %cst_22 = arith.constant 0.000000e+00 : f32
      %27 = arith.subf %cst_22, %26 : f32
      %cst_23 = arith.constant 2.500000e-01 : f32
      %28 = arith.mulf %27, %cst_23 : f32
      %29 = vector.shape_cast %21 : vector<4x1xf32> to vector<1x4x1xf32>
      %cst_24 = arith.constant dense<0.000000e+00> : vector<1xf32>
      %30 = vector.multi_reduction <add>, %29, %cst_24 [1, 2] : vector<1x4x1xf32> to vector<1xf32>
      %31 = vector.shape_cast %30 : vector<1xf32> to vector<1x1x1xf32>
      %32 = vector.extract %31[0, 0, 0] : f32 from vector<1x1x1xf32>
      %cst_25 = arith.constant 2.500000e-01 : f32
      %33 = arith.mulf %32, %cst_25 : f32
      %34 = vector.broadcast %33 : f32 to vector<4x1xf32>
      %35 = arith.subf %21, %34 : vector<4x1xf32>
      %36 = arith.mulf %35, %35 : vector<4x1xf32>
      %37 = vector.shape_cast %36 : vector<4x1xf32> to vector<1x4x1xf32>
      %cst_26 = arith.constant dense<0.000000e+00> : vector<1xf32>
      %38 = vector.multi_reduction <add>, %37, %cst_26 [1, 2] : vector<1x4x1xf32> to vector<1xf32>
      %39 = vector.shape_cast %38 : vector<1xf32> to vector<1x1x1xf32>
      %40 = vector.extract %39[0, 0, 0] : f32 from vector<1x1x1xf32>
      %cst_27 = arith.constant 2.500000e-01 : f32
      %41 = arith.mulf %40, %cst_27 : f32
      %42 = math.sqrt %41 : f32
      %cst_28 = arith.constant 9.99999993E-9 : f32
      %43 = arith.addf %42, %cst_28 : f32
      %44 = vector.broadcast %43 : f32 to vector<4x1xf32>
      %45 = arith.divf %35, %44 : vector<4x1xf32>
      %46 = arith.mulf %45, %19 : vector<4x1xf32>
      %47 = vector.shape_cast %46 : vector<4x1xf32> to vector<1x4x1xf32>
      %cst_29 = arith.constant dense<0.000000e+00> : vector<1xf32>
      %48 = vector.multi_reduction <add>, %47, %cst_29 [1, 2] : vector<1x4x1xf32> to vector<1xf32>
      %49 = vector.shape_cast %48 : vector<1xf32> to vector<1x1x1xf32>
      %50 = vector.extract %49[0, 0, 0] : f32 from vector<1x1x1xf32>
      %cst_30 = arith.constant 0.000000e+00 : f32
      %51 = arith.subf %cst_30, %50 : f32
      %cst_31 = arith.constant 1.562500e-02 : f32
      %52 = arith.mulf %51, %cst_31 : f32
      %53 = vector.shape_cast %19 : vector<4x1xf32> to vector<1x4x1xf32>
      %cst_32 = arith.constant dense<0.000000e+00> : vector<1xf32>
      %54 = vector.multi_reduction <add>, %53, %cst_32 [1, 2] : vector<1x4x1xf32> to vector<1xf32>
      %55 = vector.shape_cast %54 : vector<1xf32> to vector<1x1x1xf32>
      %56 = vector.extract %55[0, 0, 0] : f32 from vector<1x1x1xf32>
      %57 = vector.shape_cast %22 : vector<4x1xf32> to vector<1x4x1xf32>
      %cst_33 = arith.constant dense<0.000000e+00> : vector<1xf32>
      %58 = vector.multi_reduction <add>, %57, %cst_33 [1, 2] : vector<1x4x1xf32> to vector<1xf32>
      %59 = vector.shape_cast %58 : vector<1xf32> to vector<1x1x1xf32>
      %60 = vector.extract %59[0, 0, 0] : f32 from vector<1x1x1xf32>
      %61 = arith.subf %56, %60 : f32
      %cst_34 = arith.constant 2.000000e-02 : f32
      %62 = arith.mulf %cst_34, %61 : f32
      %cst_35 = arith.constant 2.500000e-01 : f32
      %63 = arith.mulf %62, %cst_35 : f32
      %64 = arith.addf %52, %63 : f32
      %65 = math.absf %45 : vector<4x1xf32>
      %66 = vector.shape_cast %65 : vector<4x1xf32> to vector<1x4x1xf32>
      %cst_36 = arith.constant dense<0.000000e+00> : vector<1xf32>
      %67 = vector.multi_reduction <add>, %66, %cst_36 [1, 2] : vector<1x4x1xf32> to vector<1xf32>
      %68 = vector.shape_cast %67 : vector<1xf32> to vector<1x1x1xf32>
      %69 = vector.extract %68[0, 0, 0] : f32 from vector<1x1x1xf32>
      %cst_37 = arith.constant 2.500000e-01 : f32
      %70 = arith.mulf %69, %cst_37 : f32
      %c0_38 = arith.constant 0 : index
      %71 = memref.load %arg4[%c0_38] : memref<5xf32, #tpu.memory_space<smem>>
      memref.store %64, %arg4[%c0_38] : memref<5xf32, #tpu.memory_space<smem>>
      %c1 = arith.constant 1 : index
      %72 = memref.load %arg4[%c1] : memref<5xf32, #tpu.memory_space<smem>>
      memref.store %52, %arg4[%c1] : memref<5xf32, #tpu.memory_space<smem>>
      %c2 = arith.constant 2 : index
      %73 = memref.load %arg4[%c2] : memref<5xf32, #tpu.memory_space<smem>>
      memref.store %63, %arg4[%c2] : memref<5xf32, #tpu.memory_space<smem>>
      %c3 = arith.constant 3 : index
      %74 = memref.load %arg4[%c3] : memref<5xf32, #tpu.memory_space<smem>>
      memref.store %28, %arg4[%c3] : memref<5xf32, #tpu.memory_space<smem>>
      %c4 = arith.constant 4 : index
      %75 = memref.load %arg4[%c4] : memref<5xf32, #tpu.memory_space<smem>>
      memref.store %70, %arg4[%c4] : memref<5xf32, #tpu.memory_space<smem>>
    } else {
    }
    return
  }
  func.func @transform_0(%arg0: i32) -> (i32, i32) {
    %c0_i32 = arith.constant 0 : i32
    %c0_i32_0 = arith.constant 0 : i32
    return %c0_i32, %arg0 : i32, i32
  }
  func.func @transform_1(%arg0: i32) -> (i32, i32) {
    %c0_i32 = arith.constant 0 : i32
    %c0_i32_0 = arith.constant 0 : i32
    %c0_i32_1 = arith.constant 0 : i32
    return %c0_i32, %c0_i32_0 : i32, i32
  }
  func.func @transform_2(%arg0: i32) -> (i32, i32) {
    %c0_i32 = arith.constant 0 : i32
    %c0_i32_0 = arith.constant 0 : i32
    %c0_i32_1 = arith.constant 0 : i32
    return %c0_i32, %c0_i32_0 : i32, i32
  }
  func.func @transform_3(%arg0: i32) -> i32 {
    %c0_i32 = arith.constant 0 : i32
    %c0_i32_0 = arith.constant 0 : i32
    return %c0_i32 : i32
  }
}

</mosaic_0001>

<bundles_post_ra>
// kernel: tpu_custom_call.1
= control target key start
LH: loop header
LB: loop body
LE: loop exit
PB: predicated region body
PF: predicated region fallthrough
CT: control target
= control target key end

     0   :  { %s274_s0 = inlined_call_operand.vmem [shape: f32[4,16], index: 0, kind: input, shape index: {}]   ;;  %s275_s1 = inlined_call_operand.vmem [shape: f32[4,1], index: 1, kind: input, shape index: {}]   ;;  %s276_s2 = inlined_call_operand.vmem [shape: f32[4,1], index: 2, kind: input, shape index: {}]   ;;  %s277_s3 = inlined_call_operand.hbm [shape: f32[5], index: 3, kind: output, shape index: {}]  }
   0x1   :  { %v22_v0 = vld [vmem:[%s274_s0] sm:$0xf] }
   0x2   :  { %8 = vsyncpa [#allocation5], 0  ;;  %v32_v1 = vmul.f32 1.442695, %v22_v0  ;;  %vm24_vm0 = vcmask 125952   ;;  %vm19_vm1 = vcmask 3072  }
   0x3   :  { %v227_v5 = vmov 0.0   ;;  %v45_v6 = vld [vmem:[%s276_s2] sm:$0xf]  ;;  %v25_v31 = vsel %vm24_vm0, %v22_v0, 0.0  ;;  %s179_s7 = sshll.u32 %s277_s3, 4  ;;  %s228_s11 = smov [#allocation4]   ;;  %s180_s7 = int_to_ptr.hbm [resolvable:$true] %s179_s7 }
   0x4   :  { %207 = vpow2.f32 %v32_v1  ;;  %21 = vst.msk [vmem:[#allocation3] sm:$0xf] %vm19_vm1, %v227_v5  ;;  %v59_v7 = vsel %vm19_vm1, %v45_v6, 0.0  ;;  %26 = vadd.xlane.f32.xlu2 %v25_v31  ;;  %v46_v55 = vld [vmem:[%s275_s1] sm:$0xf] }
   0x5   :  { %20 = vst.msk [vmem:[#allocation2] sm:$0xf] %vm19_vm1, %v227_v5  ;;  %60 = vadd.xlane.f32.xlu1 %v59_v7  ;;  %v138_v56 = vsel %vm19_vm1, %v46_v55, 0.0 }
   0xa   :  { %v208_v2 = vpop.eup %207 }
   0xb   :  { %v34_v3 = vmul.f32 %v208_v2, %v22_v0  ;;  %v31_v8 = vld [vmem:[#allocation3] sm:$0xf] }
   0xc   :  { %v23_v51 = vld [vmem:[#allocation2] sm:$0xf] }
   0xd   :  { %v35_v4 = vsel %vm24_vm0, %v34_v3, 0.0 }
   0xe   :  { %36 = vadd.xlane.f32.xlu0 %v35_v4 }
  0x77   :  { %v27_v50 = vpop.xlane.xlu2 %26 }
  0x78   :  { %v61_v13 = vpop.xlane.xlu1 %60  ;;  %v28_v52 = vadd.f32 %v27_v50, %v23_v51 }
  0x79   :  { %v62_v14 = vrot.slane %v61_v13, 4 }
  0x7a   :  { %30 = vst.msk [vmem:[#allocation2] sm:$0xf] %vm19_vm1, %v28_v52 }
  0x7b   :  { %v63_v15 = vadd.f32 %v62_v14, %v61_v13 }
  0x7d   :  { %v64_v16 = vrot.slane %v63_v15, 2 }
  0x7f   :  { %v65_v20 = vadd.f32 %v64_v16, %v63_v15 }
  0x81   :  { %v37_v9 = vpop.xlane.xlu0 %36  ;;  %v66_v23 = vrot.slane %v65_v20, 1  ;;  %v43_v53 = vld [vmem:[#allocation2] sm:$0xf] }
  0x82   :  { %v38_v10 = vadd.f32 %v37_v9, %v31_v8  ;;  %v128_v54 = vsel %vm19_vm1, %v43_v53, 0.0 }
  0x83   :  { %v67_v26 = vadd.f32 %v66_v23, %v65_v20 }
  0x84   :  { %39 = vst.msk [vmem:[#allocation3] sm:$0xf] %vm19_vm1, %v38_v10 }
  0x8b   :  { %v44_v11 = vld [vmem:[#allocation3] sm:$0xf] }
  0x8c   :  { %v47_v12 = vsel %vm19_vm1, %v44_v11, 0.0 }
  0x8d   :  { %48 = vadd.xlane.f32.xlu0 %v47_v12 }
  0x95   :  { %129 = vadd.xlane.f32.xlu0 %v128_v54 }
 0x100   :  { %v49_v17 = vpop.xlane.xlu0 %48 }
 0x101   :  { %v50_v18 = vrot.slane %v49_v17, 4 }
 0x103   :  { %v51_v19 = vadd.f32 %v50_v18, %v49_v17 }
 0x105   :  { %v52_v21 = vrot.slane %v51_v19, 2 }
 0x107   :  { %v53_v22 = vadd.f32 %v52_v21, %v51_v19 }
 0x108   :  { %v130_v9 = vpop.xlane.xlu0 %129 }
 0x109   :  { %v54_v24 = vrot.slane %v53_v22, 1  ;;  %v131_v11 = vrot.slane %v130_v9, 4 }
 0x10b   :  { %v55_v25 = vadd.f32 %v54_v24, %v53_v22  ;;  %v132_v13 = vadd.f32 %v131_v11, %v130_v9 }
 0x10d   :  { %189 = vpush %v55_v25  ;;  %v133_v15 = vrot.slane %v132_v13, 2 }
 0x10e   :  { %191 = vpush %v67_v26 }
 0x10f   :  { %v134_v20 = vadd.f32 %v133_v15, %v132_v13 }
 0x111   :  { %v135_v25 = vrot.slane %v134_v20, 1 }
 0x113   :  { %v136_v31 = vadd.f32 %v135_v25, %v134_v20 }
 0x13e   :  { %s190_s0 = spop %189 }
 0x13f   :  { %s57_s2 = ssub.f32 0.0, %s190_s0  ;;  %s192_s16 = spop %191 }
 0x140   :  { %s69_s17 = smul.f32 0.25, %s192_s16 }
 0x141   :  { %s58_s18 = smul.f32 0.25, %s57_s2 }
 0x142   :  { %v70_v27 = vstv %s69_s17 }
 0x143   :  { %171 = sst [smem:[#allocation4 + $0x3]] %s58_s18  ;;  %v71_v28 = vsub.f32 %v45_v6, %v70_v27 }
 0x145   :  { %v72_v29 = vmul.f32 %v71_v28, %v71_v28 }
 0x147   :  { %v73_v30 = vsel %vm19_vm1, %v72_v29, 0.0 }
 0x148   :  { %74 = vadd.xlane.f32.xlu1 %v73_v30 }
 0x150   :  { %139 = vadd.xlane.f32.xlu1 %v138_v56 }
 0x1bb   :  { %v75_v32 = vpop.xlane.xlu1 %74 }
 0x1bc   :  { %v76_v33 = vrot.slane %v75_v32, 4 }
 0x1be   :  { %v77_v34 = vadd.f32 %v76_v33, %v75_v32 }
 0x1c0   :  { %v78_v35 = vrot.slane %v77_v34, 2 }
 0x1c2   :  { %v79_v36 = vadd.f32 %v78_v35, %v77_v34 }
 0x1c3   :  { %v140_v10 = vpop.xlane.xlu1 %139 }
 0x1c4   :  { %v80_v37 = vrot.slane %v79_v36, 1  ;;  %v141_v12 = vrot.slane %v140_v10, 4 }
 0x1c6   :  { %v81_v38 = vadd.f32 %v80_v37, %v79_v36  ;;  %v142_v14 = vadd.f32 %v141_v12, %v140_v10 }
 0x1c8   :  { %193 = vpush %v81_v38  ;;  %v143_v17 = vrot.slane %v142_v14, 2 }
 0x1ca   :  { %v144_v21 = vadd.f32 %v143_v17, %v142_v14 }
 0x1f9   :  { %s194_s19 = spop %193 }
 0x1fa   :  { %s83_s20 = smul.f32 0.25, %s194_s19 }
 0x1fc   :  { %v84_v39 = vstv %s83_s20 }
 0x1fd   :  { %209 = vrsqrt.f32 %v84_v39  ;;  %vm92_vm2 = vcmp.eq.f32.partialorder %v84_v39, inf  ;;  %v95_v47 = vand.u32 2147483648, %v84_v39  ;;  %vm94_vm3 = vcmp.eq.f32.partialorder %v84_v39, 0.0 }
 0x203   :  { %v210_v40 = vpop.eup %209 }
 0x204   :  { %v86_v41 = vmul.f32 %v210_v40, %v84_v39 }
 0x206   :  { %v87_v42 = vmul.f32 %v210_v40, %v86_v41 }
 0x208   :  { %v88_v43 = vmul.f32 0.5, %v87_v42 }
 0x20a   :  { %v89_v44 = vsub.f32 1.5, %v88_v43 }
 0x20c   :  { %v90_v45 = vmul.f32 %v210_v40, %v89_v44 }
 0x20e   :  { %v91_v46 = vmul.f32 %v90_v45, %v84_v39 }
 0x210   :  { %v93_v48 = vsel %vm92_vm2, %v84_v39, %v91_v46 }
 0x211   :  { %v96_v49 = vsel %vm94_vm3, %v95_v47, %v93_v48 }
 0x212   :  { %195 = vpush %v96_v49 }
 0x243   :  { %s196_s23 = spop %195 }
 0x244   :  { %s98_s24 = sadd.f32 1e-08, %s196_s23 }
 0x246   :  { %v99_v57 = vstv %s98_s24 }
 0x247   :  { %211 = vrcp.f32 %v99_v57  ;;  %v111_v61 = vand.u32 2147483648, %v99_v57  ;;  %v109_v63 = vand.u32 2147483647, %v99_v57  ;;  %vm105_vm5 = vweird.f32 %v99_v57 }
 0x249   :  { %v112_v1 = vor.u32 1.1754944e-38, %v111_v61  ;;  %vm110_vm7 = vcmp.eq.f32.partialorder %v109_v63, 8.507059e+37 }
 0x24d   :  { %v212_v58 = vpop.eup %211 }
 0x24e   :  { %v101_v59 = vmul.f32 %v212_v58, %v99_v57  ;;  %vm106_vm4 = vweird.f32 %v212_v58 }
 0x24f   :  { %vm107_vm6 = vmor %vm105_vm5, %vm106_vm4 }
 0x250   :  { %v102_v60 = vsub.f32 1.0, %v101_v59 }
 0x252   :  { %v103_v62 = vmul.f32 %v212_v58, %v102_v60 }
 0x254   :  { %v104_v0 = vadd.f32 %v212_v58, %v103_v62 }
 0x256   :  { %v108_v2 = vsel %vm107_vm6, %v212_v58, %v104_v0 }
 0x257   :  { %v113_v3 = vsel %vm110_vm7, %v112_v1, %v108_v2 }
 0x258   :  { %v114_v4 = vmul.f32 %v113_v3, %v71_v28  ;;  %v145_v28 = vrot.slane %v144_v21, 1 }
 0x25a   :  { %v115_v5 = vmul.f32 %v114_v4, %v43_v53  ;;  %v152_v7 = vand.u32 2147483647, %v114_v4  ;;  %v146_v33 = vadd.f32 %v145_v28, %v144_v21 }
 0x25c   :  { %v116_v6 = vsel %vm19_vm1, %v115_v5, 0.0  ;;  %v153_v8 = vsel %vm19_vm1, %v152_v7, 0.0 }
 0x25d   :  { %117 = vadd.xlane.f32.xlu2 %v116_v6 }
 0x265   :  { %154 = vadd.xlane.f32.xlu2 %v153_v8 }
 0x2d0   :  { %v118_v16 = vpop.xlane.xlu2 %117 }
 0x2d1   :  { %v119_v18 = vrot.slane %v118_v16, 4 }
 0x2d3   :  { %v120_v19 = vadd.f32 %v119_v18, %v118_v16 }
 0x2d5   :  { %v121_v22 = vrot.slane %v120_v19, 2 }
 0x2d7   :  { %v122_v23 = vadd.f32 %v121_v22, %v120_v19 }
 0x2d8   :  { %v155_v24 = vpop.xlane.xlu2 %154 }
 0x2d9   :  { %v156_v26 = vrot.slane %v155_v24, 4  ;;  %v123_v27 = vrot.slane %v122_v23, 1 }
 0x2db   :  { %v157_v29 = vadd.f32 %v156_v26, %v155_v24  ;;  %v124_v30 = vadd.f32 %v123_v27, %v122_v23 }
 0x2dd   :  { %v158_v32 = vrot.slane %v157_v29, 2  ;;  %197 = vpush %v124_v30 }
 0x2de   :  { %199 = vpush %v136_v31 }
 0x2df   :  { %v159_v34 = vadd.f32 %v158_v32, %v157_v29  ;;  %201 = vpush %v146_v33 }
 0x2e1   :  { %v160_v35 = vrot.slane %v159_v34, 1 }
 0x2e3   :  { %v161_v36 = vadd.f32 %v160_v35, %v159_v34 }
 0x2e5   :  { %203 = vpush %v161_v36 }
 0x30e   :  { %s198_s1 = spop %197 }
 0x30f   :  { %s126_s25 = ssub.f32 0.0, %s198_s1  ;;  %s200_s26 = spop %199 }
 0x310   :  { %s202_s27 = spop %201 }
 0x311   :  { %s127_s28 = smul.f32 0.015625, %s126_s25  ;;  %s148_s29 = ssub.f32 %s200_s26, %s202_s27 }
 0x313   :  { %167 = sst [smem:[#allocation4 + $0x1]] %s127_s28  ;;  %s149_s30 = smul.f32 0.02, %s148_s29 }
 0x315   :  { %s150_s4 = smul.f32 0.25, %s149_s30 }
 0x316   :  { %s204_s8 = spop %203 }
 0x317   :  { %s151_s9 = sadd.f32 %s150_s4, %s127_s28  ;;  %s163_s10 = smul.f32 0.25, %s204_s8 }
 0x318   :  { %169 = sst [smem:[#allocation4 + $0x2]] %s150_s4 }
 0x319   :  { %165 = sst [smem:[#allocation4]] %s151_s9 }
 0x31a   :  { %173 = sst [smem:[#allocation4 + $0x4]] %s163_s10 }
 0x31b   :  { %182 = dma.smem_to_hbm %s228_s11, 16, %s180_s7, [#allocation5]  }
 0x31c   :  { %225 = dma.done.wait [#allocation5], 16  }
 0x31d   :  { %226 = vsyncadd [#allocation5], 4294967280 }
 0x31e   :  { %187 = sfence }
 0x31f   :  { %188 = vsyncpa [#allocation5], 1 }

</bundles_post_ra>
